<compile_context>
chip_gen: v7x
topology: tpu7x:2x2x1
jax: 0.10.0
libtpu: 0.0.40
codegen_flags: <defaults>
</compile_context>

<pallas_src>
import math

import jax
import jax.numpy as jnp
from jax.experimental import pallas as pl
from jax.experimental.pallas import tpu as pltpu


def _pos_embed_add_kernel(x_ref, pe_ref, o_ref):
    # x_ref: (tile_g, SUB, L), pe_ref: (1, SUB, L) -> leading-dim broadcast add.
    o_ref[...] = x_ref[...].astype(o_ref.dtype) + pe_ref[...]


def _sublanes(*dtypes):
    """Sublanes per vreg for the narrowest dtype involved (>= 8)."""
    min_itemsize = min(jnp.dtype(d).itemsize for d in dtypes)
    return max(8, 32 // max(min_itemsize, 1))


def _default_block_bytes():
    """Per-generation target tile size (double-buffered in+out = 4x this)."""
    try:
        kind = jax.devices()[0].device_kind.lower()
    except Exception:
        kind = ""
    if "v5" in kind:
        return 2 << 20   # v5e scoped-VMEM default is 16 MiB -> keep 4x block <= 8 MiB
    return 4 << 20       # v6e / v7x: 4x block = 16 MiB, well within 32 MiB default


def position_embedding(x, weight, *, target_block_bytes=None):
    """x: (..., S, D); weight: (sequence_length, D) with sequence_length >= D."""
    orig_shape = x.shape
    D = orig_shape[-1]
    seq_len, emb_dim = weight.shape
    if emb_dim != D:
        raise ValueError(f"embedding dim {emb_dim} must equal x.size(-1)={D}")
    if seq_len < D:
        # PyTorch would raise an out-of-range gather here; make it explicit.
        raise ValueError(f"sequence_length={seq_len} must be >= x.size(-1)={D}")

    if target_block_bytes is None:
        target_block_bytes = _default_block_bytes()

    # PyTorch promotion: x + f32 EmbeddingBag output promotes (bf16 -> f32).
    out_dtype = jnp.result_type(x.dtype, weight.dtype)
    in_itemsize = jnp.dtype(x.dtype).itemsize
    out_itemsize = jnp.dtype(out_dtype).itemsize

    # EmbeddingBag mean over the bag [0..D-1]: a constant (D,) vector (f32 acc).
    pe_vec = jnp.mean(weight[:D, :].astype(jnp.float32), axis=0)

    # Lane-dense row width and sublane-aligned group height.
    L = (D * 128) // math.gcd(D, 128)            # multiple of both D and 128
    SUB = _sublanes(x.dtype, out_dtype)           # 8 / 16 / 32
    group_elems = SUB * L

    n_elems = x.size
    pad = (-n_elems) % group_elems
    flat = x.reshape(-1)
    if pad:
        flat = jnp.pad(flat, (0, pad))            # padded tail is sliced off below
    num_groups = (n_elems + pad) // group_elems
    x3 = flat.reshape(num_groups, SUB, L)

    # pe as a full (1, SUB, L) slab: in-kernel add is a pure leading-dim broadcast.
    pe_row = jnp.tile(pe_vec, L // D).astype(out_dtype)          # (L,)
    pe3 = jnp.tile(pe_row, (SUB, 1)).reshape(1, SUB, L)

    # Tile size: as many groups as fit the per-generation byte budget; cdiv grid
    # handles the ragged last block (no divisor requirement).
    bytes_per_group = group_elems * max(in_itemsize, out_itemsize)
    tile_g = max(1, target_block_bytes // bytes_per_group)
    tile_g = min(tile_g, num_groups)
    grid = (pl.cdiv(num_groups, tile_g),)

    # Only raise the scoped-VMEM limit if the (edge-case, huge-L) blocks need it.
    vmem_need = (2 * tile_g * group_elems * (in_itemsize + out_itemsize)
                 + 2 * group_elems * out_itemsize)
    vmem_limit = None
    if vmem_need > (28 << 20):
        vmem_limit = min(vmem_need + (8 << 20), 64 << 20)

    cost = pl.CostEstimate(
        flops=n_elems,
        transcendentals=0,
        bytes_accessed=n_elems * (in_itemsize + out_itemsize),
    )

    out3 = pl.pallas_call(
        _pos_embed_add_kernel,
        out_shape=jax.ShapeDtypeStruct((num_groups, SUB, L), out_dtype),
        grid_spec=pl.GridSpec(
            grid=grid,
            in_specs=[
                pl.BlockSpec((tile_g, SUB, L), lambda i: (i, 0, 0)),  # streamed x
                pl.BlockSpec((1, SUB, L), lambda i: (0, 0, 0)),       # resident pe
            ],
            out_specs=pl.BlockSpec((tile_g, SUB, L), lambda i: (i, 0, 0)),
        ),
        compiler_params=pltpu.CompilerParams(
            dimension_semantics=("parallel",),
            vmem_limit_bytes=vmem_limit,
        ),
        cost_estimate=cost,
    )(x3, pe3)
    # TODO(synk): expose input_output_aliases={0: 0} behind a donate flag when the
    # caller donates x and dtypes match (saves one HBM allocation).

    out_flat = out3.reshape(-1)
    if pad:
        out_flat = out_flat[:n_elems]
    return out_flat.reshape(orig_shape)


if __name__ == "__main__":
    key = jax.random.PRNGKey(0)
    kx, kw = jax.random.split(key)

    B, S, D = 2, 8, 16          # x: (batch, seq-rows, dim); x.size(-1) == dim
    sequence_length = 16        # EmbeddingBag table size (>= D)

    x = jax.random.normal(kx, (B, S, D), dtype=jnp.float32)
    # Deterministic synthetic EmbeddingBag weight (PyTorch default init ~ N(0,1)).
    weight = jax.random.normal(kw, (sequence_length, D), dtype=jnp.float32)

    out = position_embedding(x, weight)
    jax.block_until_ready(out)

    # Pure-JAX reference of the exact PyTorch forward (EmbeddingBag mean bag).
    ref = x + jnp.mean(weight[:D, :], axis=0)
    assert out.shape == x.shape and out.dtype == ref.dtype
    assert jnp.allclose(out, ref, atol=1e-5), "mismatch vs reference"

    print("KERNEL_OK")
</pallas_src>

<mosaic_0001>
module attributes {stable_mosaic.version = 11 : i64} {
  func.func @_pos_embed_add_kernel(%arg0: i32, %arg1: memref<1x8x128xf32, #tpu.memory_space<vmem>>, %arg2: memref<1x8x128xf32, #tpu.memory_space<vmem>>, %arg3: memref<1x8x128xf32, #tpu.memory_space<vmem>>) attributes {dimension_semantics = [#tpu.dimension_semantics<parallel>], iteration_bounds = array<i64: 1>, scalar_prefetch = 0 : i64, scratch_operands = 0 : i64, tpu.core_type = #tpu.core_type<tc>, window_params = [{transform_indices = @transform_0, window_bounds = array<i64: 1, 8, 128>}, {pipeline_mode = #tpu.pipeline_mode<synchronous>, transform_indices = @transform_1, window_bounds = array<i64: 1, 8, 128>}, {transform_indices = @transform_2, window_bounds = array<i64: 1, 8, 128>}]} {
    %c0 = arith.constant 0 : index
    %c0_0 = arith.constant 0 : index
    %c0_1 = arith.constant 0 : index
    %0 = vector.load %arg1[%c0, %c0_0, %c0_1] : memref<1x8x128xf32, #tpu.memory_space<vmem>>, vector<1x8x128xf32>
    %c0_2 = arith.constant 0 : index
    %c0_3 = arith.constant 0 : index
    %c0_4 = arith.constant 0 : index
    %1 = vector.load %arg2[%c0_2, %c0_3, %c0_4] : memref<1x8x128xf32, #tpu.memory_space<vmem>>, vector<1x8x128xf32>
    %2 = arith.addf %0, %1 : vector<1x8x128xf32>
    %c0_5 = arith.constant 0 : index
    %c0_6 = arith.constant 0 : index
    %c0_7 = arith.constant 0 : index
    %3 = vector.load %arg3[%c0_5, %c0_6, %c0_7] : memref<1x8x128xf32, #tpu.memory_space<vmem>>, vector<1x8x128xf32>
    tpu.vector_store %arg3[%c0_5, %c0_6, %c0_7], %2 {strides = array<i32>} : memref<1x8x128xf32, #tpu.memory_space<vmem>>, vector<1x8x128xf32>,
    return
  }
  func.func @transform_0(%arg0: i32) -> (i32, i32, i32) {
    %c0_i32 = arith.constant 0 : i32
    %c0_i32_0 = arith.constant 0 : i32
    %c0_i32_1 = arith.constant 0 : i32
    return %arg0, %c0_i32, %c0_i32_0 : i32, i32, i32
  }
  func.func @transform_1(%arg0: i32) -> (i32, i32, i32) {
    %c0_i32 = arith.constant 0 : i32
    %c0_i32_0 = arith.constant 0 : i32
    %c0_i32_1 = arith.constant 0 : i32
    %c0_i32_2 = arith.constant 0 : i32
    return %c0_i32, %c0_i32_0, %c0_i32_1 : i32, i32, i32
  }
  func.func @transform_2(%arg0: i32) -> (i32, i32, i32) {
    %c0_i32 = arith.constant 0 : i32
    %c0_i32_0 = arith.constant 0 : i32
    %c0_i32_1 = arith.constant 0 : i32
    return %arg0, %c0_i32, %c0_i32_0 : i32, i32, i32
  }
}

</mosaic_0001>

<bundles_post_ra>
// kernel: tpu_custom_call.1
= control target key start
LH: loop header
LB: loop body
LE: loop exit
PB: predicated region body
PF: predicated region fallthrough
CT: control target
= control target key end

     0   :  { %7 = vsyncpa [#allocation3], 0  ;;  %s185_s0 = inlined_call_operand.hbm [shape: f32[1,8,128], index: 0, kind: input, shape index: {}]   ;;  %s186_s1 = inlined_call_operand.hbm [shape: f32[1,8,128], index: 1, kind: input, shape index: {}]   ;;  %s187_s2 = inlined_call_operand.hbm [shape: f32[1,8,128], index: 2, kind: output, shape index: {}]  }
   0x1   :  { %8 = vsyncpa [#allocation6], 0 }
   0x2   :  { %9 = vsyncpa [#allocation4], 0  ;;  %s131_s9 = smov [#allocation2]   ;;  %s132_s11 = smov [#allocation5]  }
   0x3   :  { %s16_s10 = sshll.u32 %s131_s9, 4  ;;  %s26_s12 = sshll.u32 %s132_s11, 4  ;;  %s17_s10 = int_to_ptr.vmem [resolvable:$true] %s16_s10  ;;  %s27_s12 = int_to_ptr.vmem [resolvable:$true] %s26_s12 }
   0x4   :  { %s59_s15 = scalar_lea.hbm %s185_s0, 128 }
   0x5   :  { %p60_p0 = scmp.ne.s32.totalorder %s185_s0, %s59_s15  ;;  %p63_p1 = scmp.lt.u32.totalorder %s59_s15, %s185_s0 }
   0x7   :  { %p65_p2 = pnand %p63_p1, %p60_p0 }
   0x9   :  { %68 = shalt.err (!%p65_p2)
}
   0xa   :  { %s69_s20 = scalar_lea.vmem %s17_s10, 128  ;;  %p74_p4 = scmp.lt.s32.totalorder %s17_s10, %s17_s10 }
   0xb   :  { %p70_p3 = scmp.ne.s32.totalorder %s17_s10, %s69_s20  ;;  %p75_p5 = scmp.lt.s32.totalorder %s69_s20, %s69_s20 }
   0xd   :  { %p76_p6 = por %p75_p5, %p74_p4 }
   0xf   :  { %p77_p7 = pnand %p76_p6, %p70_p3 }
  0x11   :  { %80 = shalt.err (!%p77_p7)
}
  0x12   :  { %19 = dma.hbm_to_vmem [thread:$0]  %s185_s0, 128, %s17_s10, [#allocation3]  }
  0x13   :  { %s81_s25 = scalar_lea.hbm %s186_s1, 128 }
  0x14   :  { %p82_p8 = scmp.ne.s32.totalorder %s186_s1, %s81_s25  ;;  %p85_p9 = scmp.lt.u32.totalorder %s81_s25, %s186_s1 }
  0x16   :  { %p87_p10 = pnand %p85_p9, %p82_p8 }
  0x18   :  { %90 = shalt.err (!%p87_p10)
}
  0x19   :  { %s91_s30 = scalar_lea.vmem %s27_s12, 128  ;;  %p96_p12 = scmp.lt.s32.totalorder %s27_s12, %s27_s12 }
  0x1a   :  { %p92_p11 = scmp.ne.s32.totalorder %s27_s12, %s91_s30  ;;  %p97_p13 = scmp.lt.s32.totalorder %s91_s30, %s91_s30 }
  0x1c   :  { %p98_p0 = por %p97_p13, %p96_p12 }
  0x1e   :  { %p99_p1 = pnand %p98_p0, %p92_p11 }
  0x20   :  { %102 = shalt.err (!%p99_p1)
}
  0x21   :  { %29 = dma.hbm_to_vmem [thread:$0]  %s186_s1, 128, %s27_s12, [#allocation6]  }
  0x22   :  { %125 = dma.done.wait [#allocation3], 128  }
  0x23   :  { %126 = vsyncadd [#allocation3], 4294967168 }
  0x24   :  { %127 = dma.done.wait [#allocation6], 128  }
  0x25   :  { %128 = vsyncadd [#allocation6], 4294967168  ;;  %s133_s4 = smov [#allocation7]   ;;  %v36_v0 = vld [vmem:[#allocation2] sm:$0xff]  ;;  %v37_v1 = vld [vmem:[#allocation5] sm:$0xff] }
  0x26   :  { %s46_s5 = sshll.u32 %s133_s4, 4  ;;  %v38_v2 = vadd.f32 %v37_v1, %v36_v0  ;;  %s47_s5 = int_to_ptr.vmem [resolvable:$true] %s46_s5 }
  0x27   :  { %s103_s6 = scalar_lea.vmem %s47_s5, 128  ;;  %p108_p3 = scmp.lt.s32.totalorder %s47_s5, %s47_s5 }
  0x28   :  { %39 = vst [vmem:[#allocation7] sm:$0xff] %v38_v2  ;;  %p104_p2 = scmp.ne.s32.totalorder %s47_s5, %s103_s6  ;;  %p109_p4 = scmp.lt.s32.totalorder %s103_s6, %s103_s6 }
  0x2a   :  { %p110_p5 = por %p109_p4, %p108_p3 }
  0x2c   :  { %p111_p6 = pnand %p110_p5, %p104_p2 }
  0x2e   :  { %114 = shalt.err (!%p111_p6)
}
  0x2f   :  { %s115_s8 = scalar_lea.hbm %s187_s2, 128 }
  0x30   :  { %p116_p7 = scmp.ne.s32.totalorder %s187_s2, %s115_s8  ;;  %p119_p8 = scmp.lt.u32.totalorder %s115_s8, %s187_s2 }
  0x32   :  { %p121_p9 = pnand %p119_p8, %p116_p7 }
  0x34   :  { %124 = shalt.err (!%p121_p9)
}
  0x35   :  { %49 = dma.vmem_to_hbm [thread:$0]  %s47_s5, 128, %s187_s2, [#allocation4]  }
  0x36   :  { %129 = dma.done.wait [#allocation4], 128  }
  0x37   :  { %130 = vsyncadd [#allocation4], 4294967168 }
  0x38   :  { %53 = vsyncpa [#allocation3], 1 }
  0x39   :  { %54 = vsyncpa [#allocation6], 1 }
  0x3a   :  { %55 = vsyncpa [#allocation4], 1 }

</bundles_post_ra>
